<compile_context>
chip_gen: v5e
topology: v5e:2x2
jax: 0.10.0
libtpu: 0.0.40
codegen_flags: <defaults>
</compile_context>

<pallas_src>
import functools

import jax
import jax.numpy as jnp
import numpy as np
from jax.experimental import pallas as pl
from jax.experimental.pallas import tpu as pltpu


def dqn_qr_kernel(x_ref,
                  w1_ref, b1_ref,
                  w2_ref, b2_ref,
                  w3_ref, b3_ref,
                  w4_ref, b4_ref,
                  w5_ref, b5_ref,
                  out_ref, *, state_dim):
    bf16 = jnp.bfloat16
    f32 = jnp.float32

    x = x_ref[...]                      # (tb, S+I) bf16, merged [state | item]
    xf = x.astype(f32)                  # mask math in f32 (fast VPU path on v5e)

    # mask = all(isfinite(item), dim=-1, keepdim=True); masked_item = item*mask
    # Item lanes are selected with a lane iota; state lanes are forced "finite"
    # for the reduction and multiplied by 1.0 (left unchanged), matching
    # torch.cat((state, item * mask), -1).  inf * 0.0 -> NaN propagates through
    # the whole row, exactly as in the PyTorch module.
    lane = jax.lax.broadcasted_iota(jnp.int32, xf.shape, 1)
    is_item = lane >= state_dim
    row_ok = jnp.all(jnp.isfinite(xf) | jnp.logical_not(is_item),
                     axis=-1, keepdims=True)               # (tb, 1) bool
    scale = jnp.where(is_item, row_ok.astype(f32), 1.0)    # (tb, S+I) f32
    xm = (xf * scale).astype(bf16)

    # fc1 .. fc5: bf16 MXU inputs, f32 accumulation, f32 bias-add / ReLU on VPU.
    h = jnp.dot(xm, w1_ref[...], preferred_element_type=f32) + b1_ref[...]
    h = jnp.maximum(h, 0.0)
    h = jnp.dot(h.astype(bf16), w2_ref[...], preferred_element_type=f32) + b2_ref[...]
    h = jnp.maximum(h, 0.0)
    h = jnp.dot(h.astype(bf16), w3_ref[...], preferred_element_type=f32) + b3_ref[...]
    h = jnp.maximum(h, 0.0)
    h = jnp.dot(h.astype(bf16), w4_ref[...], preferred_element_type=f32) + b4_ref[...]
    h = jnp.maximum(h, 0.0)
    q = jnp.dot(h.astype(bf16), w5_ref[...], preferred_element_type=f32) + b5_ref[...]

    out_ref[...] = q.astype(out_ref.dtype)    # (tb, n_quantiles) f32 store


def _round_up(x, m):
    return ((x + m - 1) // m) * m


def prepare_kernel_params(params):
    """One-time param prep: bf16 weights (in, out), (1, out) f32 biases."""
    bf16 = jnp.bfloat16
    f32 = jnp.float32
    kparams = {}
    for i in range(1, 6):
        kparams[f"w{i}"] = params[f"w{i}"].astype(bf16)
        kparams[f"b{i}"] = params[f"b{i}"].reshape(1, -1).astype(f32)
    n_quantiles = params["w5"].shape[1]
    return kparams, n_quantiles


def dqn_qr_forward(state, item, kparams, n_quantiles, *,
                   block_batch=2048,          # sweep 1024-4096 (v6e: up to ~8192)
                   min_grid_steps=2,          # v7x: keep both TensorCores busy
                   vmem_limit_bytes=48 << 20, # > 16/32 MiB scoped defaults, < v7x 64 MiB phys
                   stream_buffers=None):      # e.g. 3 if xprof shows exposed DMA
    """state: (B, S) f32, item: (B, I) f32 -> quantiles (B, n_quantiles) f32."""
    B, S = state.shape
    I = item.shape[1]
    nq = n_quantiles

    # Merge state|item into a single bf16 stream (halves input HBM reads,
    # one DMA + one fc1 dot per grid step).  Finiteness survives the bf16 cast.
    x = jnp.concatenate([state, item], axis=-1).astype(jnp.bfloat16)

    # Batch tile: multiple of 8 sublanes; capped so the grid has at least
    # `min_grid_steps` steps (v7x TC sharding); batch padded to a tile multiple
    # (pad rows are finite zeros, sliced off below).
    tb = min(_round_up(block_batch, 8), _round_up(B, 8))
    if min_grid_steps > 1:
        tb = min(tb, _round_up(pl.cdiv(B, min_grid_steps), 8))
    tb = max(tb, 8)
    b_pad = _round_up(B, tb)
    if b_pad != B:
        x = jnp.pad(x, ((0, b_pad - B), (0, 0)))
    grid = (b_pad // tb,)

    stream_kwargs = {}
    if stream_buffers is not None:
        stream_kwargs["pipeline_mode"] = pl.Buffered(stream_buffers)

    def stream(feat):        # batch-tiled, double(+)-buffered streams
        return pl.BlockSpec((tb, feat), lambda i: (i, 0), **stream_kwargs)

    def resident(arr):       # weights/biases resident in VMEM across grid steps
        return pl.BlockSpec(arr.shape, lambda i: (0, 0))

    args = (x,
            kparams["w1"], kparams["b1"],
            kparams["w2"], kparams["b2"],
            kparams["w3"], kparams["b3"],
            kparams["w4"], kparams["b4"],
            kparams["w5"], kparams["b5"])
    in_specs = [stream(S + I)] + [resident(a) for a in args[1:]]

    out = pl.pallas_call(
        functools.partial(dqn_qr_kernel, state_dim=S),
        out_shape=jax.ShapeDtypeStruct((b_pad, nq), jnp.float32),
        grid=grid,
        in_specs=in_specs,
        out_specs=stream(nq),
        compiler_params=pltpu.CompilerParams(
            dimension_semantics=("parallel",),      # v7x: shard over both TCs
            vmem_limit_bytes=vmem_limit_bytes),
    )(*args)
    return out[:B]


def init_params(key, hidden_size, state_item_join_size, n_quantiles):
    """Deterministic init; Linear weights stored as (in, out)."""
    dims = [
        (state_item_join_size, hidden_size),    # fc1
        (hidden_size, hidden_size),             # fc2
        (hidden_size, hidden_size // 2),        # fc3
        (hidden_size // 2, 256),                # fc4
        (256, n_quantiles),                     # fc5
    ]
    params = {}
    for i, (fan_in, fan_out) in enumerate(dims, start=1):
        key, kw, kb = jax.random.split(key, 3)
        bound = 1.0 / np.sqrt(fan_in)  # PyTorch nn.Linear default init range
        params[f"w{i}"] = jax.random.uniform(
            kw, (fan_in, fan_out), jnp.float32, -bound, bound)
        params[f"b{i}"] = jax.random.uniform(
            kb, (fan_out,), jnp.float32, -bound, bound)
    return params


def reference_forward_f32(state, item, params):
    """Pure f32, PyTorch-equivalent reference."""
    mask = jnp.all(jnp.isfinite(item), axis=-1, keepdims=True)
    x = jnp.concatenate([state, item * mask.astype(item.dtype)], axis=-1)
    h = jax.nn.relu(x @ params["w1"] + params["b1"])
    h = jax.nn.relu(h @ params["w2"] + params["b2"])
    h = jax.nn.relu(h @ params["w3"] + params["b3"])
    h = jax.nn.relu(h @ params["w4"] + params["b4"])
    return h @ params["w5"] + params["b5"]


def reference_forward_bf16(state, item, params):
    """Mimics the kernel's numerics (bf16-cast merged inputs, bf16 MXU inputs,
    f32 accumulation, f32 bias/ReLU)."""
    bf16 = jnp.bfloat16
    f32 = jnp.float32
    s_dim = state.shape[1]
    x = jnp.concatenate([state, item], axis=-1).astype(bf16).astype(f32)
    item_part = x[:, s_dim:]
    mask = jnp.all(jnp.isfinite(item_part), axis=-1, keepdims=True).astype(f32)
    scale = jnp.concatenate(
        [jnp.ones_like(x[:, :s_dim]), jnp.broadcast_to(mask, item_part.shape)],
        axis=-1)
    h = (x * scale).astype(bf16)
    h = jnp.dot(h, params["w1"].astype(bf16), preferred_element_type=f32) + params["b1"]
    h = jnp.maximum(h, 0.0)
    for i in (2, 3, 4):
        h = jnp.dot(h.astype(bf16), params[f"w{i}"].astype(bf16),
                    preferred_element_type=f32) + params[f"b{i}"]
        h = jnp.maximum(h, 0.0)
    return jnp.dot(h.astype(bf16), params["w5"].astype(bf16),
                   preferred_element_type=f32) + params["b5"]


if __name__ == "__main__":
    hidden_size = 32
    state_dim = 16
    item_dim = 8
    state_item_join_size = state_dim + item_dim
    n_quantiles = 16
    batch = 8

    key = jax.random.PRNGKey(0)
    kparam, ks, ki = jax.random.split(key, 3)

    params = init_params(kparam, hidden_size, state_item_join_size, n_quantiles)
    state = jax.random.normal(ks, (batch, state_dim), jnp.float32)
    item = jax.random.normal(ki, (batch, item_dim), jnp.float32)
    # make one row non-finite to exercise the mask / NaN-propagation path
    item = item.at[1, 3].set(jnp.inf)

    kernel_params, nq = prepare_kernel_params(params)
    out = dqn_qr_forward(state, item, kernel_params, nq)
    out = jax.block_until_ready(out)
    assert out.shape == (batch, n_quantiles)

    # Tight check vs a reference that mimics the kernel's bf16-input numerics.
    ref_bf16 = reference_forward_bf16(state, item, params)
    assert np.allclose(np.asarray(out), np.asarray(ref_bf16),
                       rtol=1e-3, atol=1e-3, equal_nan=True)

    # Loose semantic check vs the pure-f32 PyTorch-equivalent reference
    # (bf16 matmul inputs are an intentional, reviewed numerics change).
    ref_f32 = reference_forward_f32(state, item, params)
    assert np.allclose(np.asarray(out), np.asarray(ref_f32),
                       rtol=5e-2, atol=5e-2, equal_nan=True)

    print("KERNEL_OK")
</pallas_src>

<mosaic_0001>
module attributes {stable_mosaic.version = 11 : i64} {
  func.func @dqn_qr_kernel(%arg0: i32, %arg1: memref<8x24xbf16, #tpu.memory_space<vmem>>, %arg2: memref<24x32xbf16, #tpu.memory_space<vmem>>, %arg3: memref<1x32xf32, #tpu.memory_space<vmem>>, %arg4: memref<32x32xbf16, #tpu.memory_space<vmem>>, %arg5: memref<1x32xf32, #tpu.memory_space<vmem>>, %arg6: memref<32x16xbf16, #tpu.memory_space<vmem>>, %arg7: memref<1x16xf32, #tpu.memory_space<vmem>>, %arg8: memref<16x256xbf16, #tpu.memory_space<vmem>>, %arg9: memref<1x256xf32, #tpu.memory_space<vmem>>, %arg10: memref<256x16xbf16, #tpu.memory_space<vmem>>, %arg11: memref<1x16xf32, #tpu.memory_space<vmem>>, %arg12: memref<8x16xf32, #tpu.memory_space<vmem>>) attributes {dimension_semantics = [#tpu.dimension_semantics<parallel>], iteration_bounds = array<i64: 1>, scalar_prefetch = 0 : i64, scratch_operands = 0 : i64, tpu.core_type = #tpu.core_type<tc>, window_params = [{transform_indices = @transform_0, window_bounds = array<i64: 8, 24>}, {pipeline_mode = #tpu.pipeline_mode<synchronous>, transform_indices = @transform_1, window_bounds = array<i64: 24, 32>}, {pipeline_mode = #tpu.pipeline_mode<synchronous>, transform_indices = @transform_2, window_bounds = array<i64: 1, 32>}, {pipeline_mode = #tpu.pipeline_mode<synchronous>, transform_indices = @transform_3, window_bounds = array<i64: 32, 32>}, {pipeline_mode = #tpu.pipeline_mode<synchronous>, transform_indices = @transform_4, window_bounds = array<i64: 1, 32>}, {pipeline_mode = #tpu.pipeline_mode<synchronous>, transform_indices = @transform_5, window_bounds = array<i64: 32, 16>}, {pipeline_mode = #tpu.pipeline_mode<synchronous>, transform_indices = @transform_6, window_bounds = array<i64: 1, 16>}, {pipeline_mode = #tpu.pipeline_mode<synchronous>, transform_indices = @transform_7, window_bounds = array<i64: 16, 256>}, {pipeline_mode = #tpu.pipeline_mode<synchronous>, transform_indices = @transform_8, window_bounds = array<i64: 1, 256>}, {pipeline_mode = #tpu.pipeline_mode<synchronous>, transform_indices = @transform_9, window_bounds = array<i64: 256, 16>}, {pipeline_mode = #tpu.pipeline_mode<synchronous>, transform_indices = @transform_10, window_bounds = array<i64: 1, 16>}, {transform_indices = @transform_11, window_bounds = array<i64: 8, 16>}]} {
    %c0 = arith.constant 0 : index
    %c0_0 = arith.constant 0 : index
    %0 = vector.load %arg1[%c0, %c0_0] : memref<8x24xbf16, #tpu.memory_space<vmem>>, vector<8x24xbf16>
    %1 = arith.extf %0 : vector<8x24xbf16> to vector<8x24xf32>
    %2 = tpu.iota {dimensions = array<i32: 1>} : vector<8x24xi32>
    %c16_i32 = arith.constant 16 : i32
    %3 = vector.broadcast %c16_i32 : i32 to vector<8x24xi32>
    %4 = arith.cmpi sge, %2, %3 : vector<8x24xi32>
    %5 = tpu.weird %1 : vector<8x24xf32> -> vector<8x24xi1>
    %cst = arith.constant dense<true> : vector<8x24xi1>
    %6 = arith.xori %5, %cst : vector<8x24xi1>
    %cst_1 = arith.constant dense<true> : vector<8x24xi1>
    %7 = arith.xori %4, %cst_1 : vector<8x24xi1>
    %8 = arith.ori %6, %7 : vector<8x24xi1>
    %cst_2 = arith.constant 1.000000e+00 : f32
    %cst_3 = arith.constant 0.000000e+00 : f32
    %9 = vector.broadcast %cst_2 : f32 to vector<8x24xf32>
    %10 = vector.broadcast %cst_3 : f32 to vector<8x24xf32>
    %11 = arith.select %8, %9, %10 : vector<8x24xi1>, vector<8x24xf32>
    %cst_4 = arith.constant dense<0x7F800000> : vector<8xf32>
    %12 = vector.multi_reduction <minimumf>, %11, %cst_4 [1] : vector<8x24xf32> to vector<8xf32>
    %cst_5 = arith.constant 0.000000e+00 : f32
    %13 = vector.broadcast %cst_5 : f32 to vector<8xf32>
    %14 = arith.cmpf ogt, %12, %13 : vector<8xf32>
    %15 = vector.shape_cast %14 : vector<8xi1> to vector<8x1xi1>
    %16 = arith.extui %15 : vector<8x1xi1> to vector<8x1xi32>
    %17 = arith.sitofp %16 : vector<8x1xi32> to vector<8x1xf32>
    %cst_6 = arith.constant 1.000000e+00 : f32
    %18 = vector.shape_cast %17 : vector<8x1xf32> to vector<8x1xf32>
    %19 = vector.broadcast %18 : vector<8x1xf32> to vector<8x24xf32>
    %20 = vector.broadcast %cst_6 : f32 to vector<8x24xf32>
    %21 = arith.select %4, %19, %20 : vector<8x24xi1>, vector<8x24xf32>
    %22 = arith.mulf %1, %21 : vector<8x24xf32>
    %23 = arith.truncf %22 : vector<8x24xf32> to vector<8x24xbf16>
    %c0_7 = arith.constant 0 : index
    %c0_8 = arith.constant 0 : index
    %24 = vector.load %arg2[%c0_7, %c0_8] : memref<24x32xbf16, #tpu.memory_space<vmem>>, vector<24x32xbf16>
    %cst_9 = arith.constant dense<0.000000e+00> : vector<8x32xf32>
    %25 = tpu.matmul %23, %24, %cst_9 {dimension_numbers = #tpu.dot_dimension_numbers<[1], [0], [0], [1], [0, 0, 1, 1], [], []>} : vector<8x24xbf16>, vector<24x32xbf16>, vector<8x32xf32> -> vector<8x32xf32>
    %c0_10 = arith.constant 0 : index
    %c0_11 = arith.constant 0 : index
    %26 = vector.load %arg3[%c0_10, %c0_11] : memref<1x32xf32, #tpu.memory_space<vmem>>, vector<1x32xf32>
    %27 = vector.broadcast %26 : vector<1x32xf32> to vector<8x32xf32>
    %28 = arith.addf %25, %27 : vector<8x32xf32>
    %cst_12 = arith.constant 0.000000e+00 : f32
    %29 = vector.broadcast %cst_12 : f32 to vector<8x32xf32>
    %30 = arith.maximumf %28, %29 : vector<8x32xf32>
    %31 = arith.truncf %30 : vector<8x32xf32> to vector<8x32xbf16>
    %c0_13 = arith.constant 0 : index
    %c0_14 = arith.constant 0 : index
    %32 = vector.load %arg4[%c0_13, %c0_14] : memref<32x32xbf16, #tpu.memory_space<vmem>>, vector<32x32xbf16>
    %cst_15 = arith.constant dense<0.000000e+00> : vector<8x32xf32>
    %33 = tpu.matmul %31, %32, %cst_15 {dimension_numbers = #tpu.dot_dimension_numbers<[1], [0], [0], [1], [0, 0, 1, 1], [], []>} : vector<8x32xbf16>, vector<32x32xbf16>, vector<8x32xf32> -> vector<8x32xf32>
    %c0_16 = arith.constant 0 : index
    %c0_17 = arith.constant 0 : index
    %34 = vector.load %arg5[%c0_16, %c0_17] : memref<1x32xf32, #tpu.memory_space<vmem>>, vector<1x32xf32>
    %35 = vector.broadcast %34 : vector<1x32xf32> to vector<8x32xf32>
    %36 = arith.addf %33, %35 : vector<8x32xf32>
    %cst_18 = arith.constant 0.000000e+00 : f32
    %37 = vector.broadcast %cst_18 : f32 to vector<8x32xf32>
    %38 = arith.maximumf %36, %37 : vector<8x32xf32>
    %39 = arith.truncf %38 : vector<8x32xf32> to vector<8x32xbf16>
    %c0_19 = arith.constant 0 : index
    %c0_20 = arith.constant 0 : index
    %40 = vector.load %arg6[%c0_19, %c0_20] : memref<32x16xbf16, #tpu.memory_space<vmem>>, vector<32x16xbf16>
    %cst_21 = arith.constant dense<0.000000e+00> : vector<8x16xf32>
    %41 = tpu.matmul %39, %40, %cst_21 {dimension_numbers = #tpu.dot_dimension_numbers<[1], [0], [0], [1], [0, 0, 1, 1], [], []>} : vector<8x32xbf16>, vector<32x16xbf16>, vector<8x16xf32> -> vector<8x16xf32>
    %c0_22 = arith.constant 0 : index
    %c0_23 = arith.constant 0 : index
    %42 = vector.load %arg7[%c0_22, %c0_23] : memref<1x16xf32, #tpu.memory_space<vmem>>, vector<1x16xf32>
    %43 = vector.broadcast %42 : vector<1x16xf32> to vector<8x16xf32>
    %44 = arith.addf %41, %43 : vector<8x16xf32>
    %cst_24 = arith.constant 0.000000e+00 : f32
    %45 = vector.broadcast %cst_24 : f32 to vector<8x16xf32>
    %46 = arith.maximumf %44, %45 : vector<8x16xf32>
    %47 = arith.truncf %46 : vector<8x16xf32> to vector<8x16xbf16>
    %c0_25 = arith.constant 0 : index
    %c0_26 = arith.constant 0 : index
    %48 = vector.load %arg8[%c0_25, %c0_26] : memref<16x256xbf16, #tpu.memory_space<vmem>>, vector<16x256xbf16>
    %cst_27 = arith.constant dense<0.000000e+00> : vector<8x256xf32>
    %49 = tpu.matmul %47, %48, %cst_27 {dimension_numbers = #tpu.dot_dimension_numbers<[1], [0], [0], [1], [0, 0, 1, 1], [], []>} : vector<8x16xbf16>, vector<16x256xbf16>, vector<8x256xf32> -> vector<8x256xf32>
    %c0_28 = arith.constant 0 : index
    %c0_29 = arith.constant 0 : index
    %50 = vector.load %arg9[%c0_28, %c0_29] : memref<1x256xf32, #tpu.memory_space<vmem>>, vector<1x256xf32>
    %51 = vector.broadcast %50 : vector<1x256xf32> to vector<8x256xf32>
    %52 = arith.addf %49, %51 : vector<8x256xf32>
    %cst_30 = arith.constant 0.000000e+00 : f32
    %53 = vector.broadcast %cst_30 : f32 to vector<8x256xf32>
    %54 = arith.maximumf %52, %53 : vector<8x256xf32>
    %55 = arith.truncf %54 : vector<8x256xf32> to vector<8x256xbf16>
    %c0_31 = arith.constant 0 : index
    %c0_32 = arith.constant 0 : index
    %56 = vector.load %arg10[%c0_31, %c0_32] : memref<256x16xbf16, #tpu.memory_space<vmem>>, vector<256x16xbf16>
    %cst_33 = arith.constant dense<0.000000e+00> : vector<8x16xf32>
    %57 = tpu.matmul %55, %56, %cst_33 {dimension_numbers = #tpu.dot_dimension_numbers<[1], [0], [0], [1], [0, 0, 1, 1], [], []>} : vector<8x256xbf16>, vector<256x16xbf16>, vector<8x16xf32> -> vector<8x16xf32>
    %c0_34 = arith.constant 0 : index
    %c0_35 = arith.constant 0 : index
    %58 = vector.load %arg11[%c0_34, %c0_35] : memref<1x16xf32, #tpu.memory_space<vmem>>, vector<1x16xf32>
    %59 = vector.broadcast %58 : vector<1x16xf32> to vector<8x16xf32>
    %60 = arith.addf %57, %59 : vector<8x16xf32>
    %c0_36 = arith.constant 0 : index
    %c0_37 = arith.constant 0 : index
    %61 = vector.load %arg12[%c0_36, %c0_37] : memref<8x16xf32, #tpu.memory_space<vmem>>, vector<8x16xf32>
    tpu.vector_store %arg12[%c0_36, %c0_37], %60 {strides = array<i32>} : memref<8x16xf32, #tpu.memory_space<vmem>>, vector<8x16xf32>,
    return
  }
  func.func @transform_0(%arg0: i32) -> (i32, i32) {
    %c0_i32 = arith.constant 0 : i32
    %c0_i32_0 = arith.constant 0 : i32
    return %arg0, %c0_i32 : i32, i32
  }
  func.func @transform_1(%arg0: i32) -> (i32, i32) {
    %c0_i32 = arith.constant 0 : i32
    %c0_i32_0 = arith.constant 0 : i32
    %c0_i32_1 = arith.constant 0 : i32
    return %c0_i32, %c0_i32_0 : i32, i32
  }
  func.func @transform_2(%arg0: i32) -> (i32, i32) {
    %c0_i32 = arith.constant 0 : i32
    %c0_i32_0 = arith.constant 0 : i32
    %c0_i32_1 = arith.constant 0 : i32
    return %c0_i32, %c0_i32_0 : i32, i32
  }
  func.func @transform_3(%arg0: i32) -> (i32, i32) {
    %c0_i32 = arith.constant 0 : i32
    %c0_i32_0 = arith.constant 0 : i32
    %c0_i32_1 = arith.constant 0 : i32
    return %c0_i32, %c0_i32_0 : i32, i32
  }
  func.func @transform_4(%arg0: i32) -> (i32, i32) {
    %c0_i32 = arith.constant 0 : i32
    %c0_i32_0 = arith.constant 0 : i32
    %c0_i32_1 = arith.constant 0 : i32
    return %c0_i32, %c0_i32_0 : i32, i32
  }
  func.func @transform_5(%arg0: i32) -> (i32, i32) {
    %c0_i32 = arith.constant 0 : i32
    %c0_i32_0 = arith.constant 0 : i32
    %c0_i32_1 = arith.constant 0 : i32
    return %c0_i32, %c0_i32_0 : i32, i32
  }
  func.func @transform_6(%arg0: i32) -> (i32, i32) {
    %c0_i32 = arith.constant 0 : i32
    %c0_i32_0 = arith.constant 0 : i32
    %c0_i32_1 = arith.constant 0 : i32
    return %c0_i32, %c0_i32_0 : i32, i32
  }
  func.func @transform_7(%arg0: i32) -> (i32, i32) {
    %c0_i32 = arith.constant 0 : i32
    %c0_i32_0 = arith.constant 0 : i32
    %c0_i32_1 = arith.constant 0 : i32
    return %c0_i32, %c0_i32_0 : i32, i32
  }
  func.func @transform_8(%arg0: i32) -> (i32, i32) {
    %c0_i32 = arith.constant 0 : i32
    %c0_i32_0 = arith.constant 0 : i32
    %c0_i32_1 = arith.constant 0 : i32
    return %c0_i32, %c0_i32_0 : i32, i32
  }
  func.func @transform_9(%arg0: i32) -> (i32, i32) {
    %c0_i32 = arith.constant 0 : i32
    %c0_i32_0 = arith.constant 0 : i32
    %c0_i32_1 = arith.constant 0 : i32
    return %c0_i32, %c0_i32_0 : i32, i32
  }
  func.func @transform_10(%arg0: i32) -> (i32, i32) {
    %c0_i32 = arith.constant 0 : i32
    %c0_i32_0 = arith.constant 0 : i32
    %c0_i32_1 = arith.constant 0 : i32
    return %c0_i32, %c0_i32_0 : i32, i32
  }
  func.func @transform_11(%arg0: i32) -> (i32, i32) {
    %c0_i32 = arith.constant 0 : i32
    %c0_i32_0 = arith.constant 0 : i32
    return %arg0, %c0_i32 : i32, i32
  }
}

</mosaic_0001>

<bundles_post_ra>
// kernel: tpu_custom_call.1
= control target key start
LH: loop header
LB: loop body
LE: loop exit
PB: predicated region body
PF: predicated region fallthrough
CT: control target
= control target key end

     0   :  { %v42_v1 = vlaneseq  ;;  %s725_s0 = inlined_call_operand.vmem [shape: bf16[8,24], index: 0, kind: input, shape index: {}]   ;;  %s726_s1 = inlined_call_operand.vmem [shape: bf16[24,32], index: 1, kind: input, shape index: {}]   ;;  %s727_s2 = inlined_call_operand.vmem [shape: f32[1,32], index: 2, kind: input, shape index: {}]   ;;  %s728_s3 = inlined_call_operand.vmem [shape: bf16[32,32], index: 3, kind: input, shape index: {}]   ;;  %s729_s4 = inlined_call_operand.vmem [shape: f32[1,32], index: 4, kind: input, shape index: {}]   ;;  %s730_s5 = inlined_call_operand.vmem [shape: bf16[32,16], index: 5, kind: input, shape index: {}]   ;;  %s731_s6 = inlined_call_operand.vmem [shape: f32[1,16], index: 6, kind: input, shape index: {}]   ;;  %s732_s7 = inlined_call_operand.vmem [shape: bf16[16,256], index: 7, kind: input, shape index: {}]   ;;  %s733_s8 = inlined_call_operand.vmem [shape: f32[1,256], index: 8, kind: input, shape index: {}]   ;;  %s734_s9 = inlined_call_operand.vmem [shape: bf16[256,16], index: 9, kind: input, shape index: {}]   ;;  %s735_s10 = inlined_call_operand.vmem [shape: f32[1,16], index: 10, kind: input, shape index: {}]   ;;  %s736_s11 = inlined_call_operand.hbm [shape: f32[8,16], index: 11, kind: output, shape index: {}]  }
   0x1   :  { %v40_v0 = vld [vmem:[%s725_s0] sm:$0xf] }
   0x2   :  { %v41_v2 = vunpack.c.l.bf16 %v40_v0  ;;  %v43_v3 = vand.u32 127, %v42_v1 }
   0x3   :  { %16 = vsyncpa [#allocation3], 0  ;;  %vm556_vm2 = vmmov 1   ;;  %vm50_vm5 = vcmask 195584   ;;  %v557_v4 = vmov 0.0   ;;  %vm79_vm7 = vcmask 1043456  }
   0x4   :  { %vm45_vm0 = vweird.f32 %v41_v2  ;;  %vm44_vm1 = vcmp.ge.s32.totalorder %v43_v3, 16  ;;  %v62_v7 = vld [vmem:[%s726_s1 + $0x8] sm:$0xf]  ;;  %v500_v11 = vld [vmem:[%s726_s1] sm:$0xff]  ;;  %vm118_vm9 = vcmask 261120   ;;  %v514_v39 = vld [vmem:[%s734_s9 + $0x38] sm:$0xff] }
   0x5   :  { %vm46_vm3 = vmxor %vm45_vm0, %vm556_vm2  ;;  %v72_v8 = vunpack.c.l.b16 %v62_v7  ;;  %v502_v17 = vld [vmem:[%s728_s3 + $0x8] sm:$0xff]  ;;  %v501_v18 = vld [vmem:[%s728_s3] sm:$0xff]  ;;  %359 = vmatpush.bf16.msra.mxu0 %v514_v39  ;;  %vm193_vm10 = vcmask 130048   ;;  %s393_s28 = sshll.u32 %s736_s11, 4  ;;  %s394_s28 = int_to_ptr.hbm [resolvable:$true] %s393_s28 }
   0x6   :  { %vm47_vm4 = vmxor %vm44_vm1, %vm556_vm2  ;;  %128 = vmatpush.bf16.msra.mxu1 %v502_v17  ;;  %v504_v19 = vld [vmem:[%s730_s5 + $0x8] sm:$0xff]  ;;  %v503_v20 = vld [vmem:[%s730_s5] sm:$0xff] }
   0x7   :  { %vm48_vm6 = vmor %vm46_vm3, %vm47_vm4  ;;  %v74_v9 = vpack.c.b16 %v72_v8, %v72_v8  ;;  %v526_v21 = vld [vmem:[%s727_s2] ss:$0 sm:$0xff]  ;;  %v506_v34 = vld [vmem:[%s732_s7 + $0x4] sm:$0xf0] }
   0x8   :  { %v49_v5 = vsel %vm48_vm6, 1.0, %v557_v4  ;;  %v527_v27 = vld [vmem:[%s729_s4] ss:$0 sm:$0xff]  ;;  %v505_v36 = vld [vmem:[%s732_s7 + $0x4] sm:$0xf]  ;;  %v522_v40 = vld [vmem:[%s734_s9 + $0x78] sm:$0xff] }
   0x9   :  { %v51_v6 = vsel %vm50_vm5, %v49_v5, inf  ;;  %v81_v10 = vsel %vm79_vm7, %v74_v9, 0  ;;  %v428_v33 = vld [vmem:[%s732_s7] sm:$0xf]  ;;  %v430_v37 = vld [vmem:[%s732_s7 + $0x8] sm:$0xf0] }
   0xa   :  { %52 = vmin.xlane.f32.xlu0 %v51_v6  ;;  %89 = vmatpush.bf16.msra.mxu2 %v81_v10  ;;  %v429_v35 = vor.u32 %v506_v34, %v428_v33  ;;  %v433_v38 = vor.u32 %v505_v36, %v430_v37  ;;  %v513_v41 = vld [vmem:[%s734_s9 + $0x30] sm:$0xff]  ;;  %v528_v43 = vld [vmem:[%s731_s6] ss:$0 sm:$0xff]  ;;  %v512_v44 = vld [vmem:[%s734_s9 + $0x28] sm:$0xff] }
   0xb   :  { %129 = vmatpush.bf16.msra.mxu1 %v501_v18  ;;  %v521_v42 = vld [vmem:[%s734_s9 + $0x70] sm:$0xff]  ;;  %360 = vmatpush.bf16.msra.mxu0 %v513_v41  ;;  %v511_v47 = vld [vmem:[%s734_s9 + $0x20] sm:$0xff]  ;;  %v510_v50 = vld [vmem:[%s734_s9 + $0x18] sm:$0xff] }
   0xc   :  { %204 = vmatpush.bf16.msra.mxu3 %v429_v35  ;;  %v509_v52 = vld [vmem:[%s734_s9 + $0x10] sm:$0xff]  ;;  %v508_v53 = vld [vmem:[%s734_s9 + $0x8] sm:$0xff]  ;;  %v507_v55 = vld [vmem:[%s734_s9] sm:$0xff] }
   0xd   :  { %v520_v54 = vld [vmem:[%s734_s9 + $0x68] sm:$0xff]  ;;  %v519_v56 = vld [vmem:[%s734_s9 + $0x60] sm:$0xff]  ;;  %v518_v57 = vld [vmem:[%s734_s9 + $0x58] sm:$0xff] }
   0xe   :  { %90 = vmatpush.bf16.msra.mxu2 %v500_v11  ;;  %v517_v58 = vld [vmem:[%s734_s9 + $0x50] sm:$0xff]  ;;  %v516_v59 = vld [vmem:[%s734_s9 + $0x48] sm:$0xff]  ;;  %v515_v60 = vld [vmem:[%s734_s9 + $0x40] sm:$0xff] }
   0xf   :  { %372 = vmatpush.bf16.msrb.mxu1 %v522_v40  ;;  %361 = vmatpush.bf16.msra.mxu0 %v512_v44  ;;  %v177_v61 = vld [vmem:[%s733_s8] sm:$0x3]  ;;  %s558_s8 = smov [#allocation2]  }
  0x10   :  { %217 = vmatpush.bf16.msrb.mxu3 %v433_v38  ;;  %v179_v62 = vperm.slane %v177_v61, 0  ;;  %s391_s1 = sshll.u32 %s558_s8, 4  ;;  %s392_s1 = int_to_ptr.vmem [resolvable:$true] %s391_s1 }
  0x12   :  { %166 = vmatpush.bf16.msrb.mxu2 %v504_v19 }
  0x13   :  { %373 = vmatpush.bf16.msrb.mxu1 %v521_v42  ;;  %362 = vmatpush.bf16.msra.mxu0 %v511_v47 }
  0x16   :  { %167 = vmatpush.bf16.msrb.mxu2 %v503_v20 }
  0x17   :  { %363 = vmatpush.bf16.msra.mxu0 %v510_v50  ;;  %374 = vmatpush.bf16.msrb.mxu1 %v520_v54 }
  0x1b   :  { %364 = vmatpush.bf16.msra.mxu0 %v509_v52  ;;  %375 = vmatpush.bf16.msrb.mxu1 %v519_v56 }
  0x1f   :  { %365 = vmatpush.bf16.msra.mxu0 %v508_v53  ;;  %376 = vmatpush.bf16.msrb.mxu1 %v518_v57 }
  0x23   :  { %366 = vmatpush.bf16.msra.mxu0 %v507_v55  ;;  %377 = vmatpush.bf16.msrb.mxu1 %v517_v58 }
  0x27   :  { %378 = vmatpush.bf16.msrb.mxu1 %v516_v59 }
  0x2b   :  { %379 = vmatpush.bf16.msrb.mxu1 %v515_v60 }
  0x7d   :  { %v53_v12 = vpop.xlane.xlu0 %52 }
  0x7e   :  { %vm54_vm8 = vcmp.gt.f32.partialorder %v53_v12, 0.0  ;;  %v529_v12 = vld [vmem:[%s735_s10] ss:$0 sm:$0xff] }
  0x7f   :  { %v402_v13 = vsel %vm54_vm8, 1.0, %v557_v4  ;;  %v180_v4 = vperm.slane %v177_v61, 1 }
  0x80   :  { %v57_v14 = vsel %vm44_vm1, %v402_v13, 1.0 }
  0x81   :  { %v58_v15 = vmul.f32 %v57_v14, %v41_v2 }
  0x83   :  { %v59_v16 = vpack.c.bf16 %v58_v15, %v58_v15 }
  0x85   :  { %407 = vmatmul.msk.bf16.vlgmr.msra.gmra.mxu2 %vm50_vm5, %v59_v16 }
 0x108   :  { %v92_v22 = vpop.f32.mrf.mxu2 }
 0x109   :  { %v93_v23 = vadd.f32 %v526_v21, %v92_v22 }
 0x10b   :  { %v96_v24 = vmax.f32 %v93_v23, 0.0 }
 0x10d   :  { %v97_v25 = vpack.c.bf16 %v96_v24, %v96_v24 }
 0x10f   :  { %416 = vmatmul.msk.bf16.vlgmr.msra.gmra.mxu1 %vm118_vm9, %v97_v25 }
 0x110   :  { %v94_v26 = vpop.f32.mrf.mxu2 }
 0x18c   :  { %v131_v28 = vpop.f32.mrf.mxu1 }
 0x18d   :  { %v132_v29 = vadd.f32 %v527_v27, %v131_v28 }
 0x18f   :  { %v135_v30 = vmax.f32 %v132_v29, 0.0 }
 0x191   :  { %v136_v31 = vpack.c.bf16 %v135_v30, %v135_v30 }
 0x193   :  { %425 = vmatmul.msk.bf16.vlgmr.msrb.gmra.mxu2 %vm118_vm9, %v136_v31 }
 0x194   :  { %v133_v32 = vpop.f32.mrf.mxu1 }
 0x216   :  { %v169_v45 = vpop.f32.mrf.mxu2 }
 0x217   :  { %v170_v46 = vadd.f32 %v528_v43, %v169_v45 }
 0x219   :  { %v173_v48 = vmax.f32 %v170_v46, 0.0 }
 0x21b   :  { %v174_v49 = vpack.c.bf16 %v173_v48, %v173_v48 }
 0x21d   :  { %434 = vmatmul.msk.bf16.vlgmr.msra.gmra.mxu3 %vm193_vm10, %v174_v49 }
 0x21e   :  { %v171_v51 = vpop.f32.mrf.mxu2 }
 0x22d   :  { %435 = vmatmul.msk.bf16.vlgmr.msrb.gmra.mxu3 %vm193_vm10, %v174_v49 }
 0x2a0   :  { %v206_v63 = vpop.f32.mrf.mxu3 }
 0x2a1   :  { %v207_v0 = vadd.f32 %v206_v63, %v179_v62 }
 0x2a3   :  { %v223_v1 = vmax.f32 %v207_v0, 0.0 }
 0x2a5   :  { %v225_v2 = vpack.c.bf16 %v223_v1, %v223_v1 }
 0x2a7   :  { %367 = vmatmul.bf16.vlgmr.msra.gmra.mxu0 %v225_v2 }
 0x2a8   :  { %v208_v3 = vpop.f32.mrf.mxu3 }
 0x2b0   :  { %v219_v5 = vpop.f32.mrf.mxu3 }
 0x2b1   :  { %v220_v6 = vadd.f32 %v219_v5, %v180_v4 }
 0x2b3   :  { %v224_v7 = vmax.f32 %v220_v6, 0.0 }
 0x2b5   :  { %v226_v8 = vpack.c.bf16 %v224_v7, %v224_v7 }
 0x2b7   :  { %380 = vmatmul.bf16.vlgmr.msrb.gmra.mxu1 %v226_v8 }
 0x2b8   :  { %v221_v9 = vpop.f32.mrf.mxu3 }
 0x324   :  { %v368_v10 = vpop.f32.mrf.mxu0 }
 0x325   :  { %v369_v13 = vadd.f32 %v529_v12, %v368_v10 }
 0x32c   :  { %v370_v11 = vpop.f32.mrf.mxu0 }
 0x334   :  { %v381_v14 = vpop.f32.mrf.mxu1 }
 0x335   :  { %v382_v15 = vadd.f32 %v381_v14, %v369_v13 }
 0x337   :  { %385 = vst.msk [vmem:[#allocation2] sm:$0xff] %vm193_vm10, %v382_v15 }
 0x338   :  { %396 = dma.vmem_to_hbm [thread:$0]  %s392_s1, 128, %s394_s28, [#allocation3]  }
 0x33c   :  { %v383_v16 = vpop.f32.mrf.mxu1 }
 0x33d   :  { %554 = dma.done.wait [#allocation3], 128  }
 0x33e   :  { %555 = vsyncadd [#allocation3], 4294967168 }
 0x33f   :  { %401 = vsyncpa [#allocation3], 1 }

</bundles_post_ra>
